<compile_context>
chip_gen: v7x
topology: tpu7x:2x2x1
jax: 0.10.0
libtpu: 0.0.40
codegen_flags: <defaults>
</compile_context>

<pallas_src>
import numpy as np
import jax
import jax.numpy as jnp
from jax.experimental import pallas as pl
from jax.experimental.pallas import tpu as pltpu


# ----------------------------------------------------------------------------
# visual_fc = Flatten -> Linear -> ReLU
# ----------------------------------------------------------------------------

def _visual_fc_kernel(x_ref, wt_ref, b_ref, o_ref):
    """Single full-K, full-OUT matmul (MXU accumulates in f32), then bias+ReLU
    epilogue in f32.  No K tiling, no accumulator scratch, no pl.when phases —
    the whole problem fits VMEM with large headroom on every generation."""
    acc = jnp.dot(x_ref[...].astype(wt_ref.dtype), wt_ref[...],
                  preferred_element_type=jnp.float32)
    o_ref[...] = jnp.maximum(acc + b_ref[...], 0.0).astype(o_ref.dtype)


def visual_fc(x_flat, w_t, b, *, row_tile=128):
    """relu(x_flat @ w_t + b).

    x_flat: [B, F] f32, w_t: [F, OUT] (bf16 or f32), b: [1, OUT] f32.

    Small B  -> grid=(1,): one dispatch, one contiguous weight DMA.
    Large B  -> grid over row tiles; weight/bias index_map is constant, so the
                weight is fetched once and stays resident across steps (the
                per-call weight re-read is the dominant cost, so this is the
                lever that matters).  Rows are independent -> "parallel".
    """
    B, F = x_flat.shape
    F2, OUT = w_t.shape
    assert F == F2
    if B > row_tile and B % row_tile == 0:
        tm, n_steps = row_tile, B // row_tile
    else:
        tm, n_steps = B, 1      # whole batch in a single grid step

    return pl.pallas_call(
        _visual_fc_kernel,
        out_shape=jax.ShapeDtypeStruct((B, OUT), x_flat.dtype),
        grid_spec=pltpu.PrefetchScalarGridSpec(
            num_scalar_prefetch=0,
            grid=(n_steps,),
            in_specs=[
                pl.BlockSpec((tm, F), lambda i: (i, 0)),    # activation rows
                pl.BlockSpec((F, OUT), lambda i: (0, 0)),   # weight (resident)
                pl.BlockSpec((1, OUT), lambda i: (0, 0)),   # bias (resident)
            ],
            out_specs=pl.BlockSpec((tm, OUT), lambda i: (i, 0)),
        ),
        compiler_params=pltpu.CompilerParams(
            dimension_semantics=("parallel",)),
    )(x_flat, w_t, b)


# ----------------------------------------------------------------------------
# spatial_output path: torch.cat([x, spatial_features], dim=1)
# ----------------------------------------------------------------------------

def _spatial_concat_kernel(x_ref, emb_ref, o_ref):
    """Channel concat on NCHW done lane-dense on the flattened
    [B, (C+E)*H*W] layout: two contiguous, 128-lane-aligned slab stores."""
    bsz, chw = x_ref.shape
    ehw = emb_ref.shape[1]
    o_ref[:, :chw] = x_ref[...]
    o_ref[:, chw:] = jnp.broadcast_to(emb_ref[...], (bsz, ehw))


def spatial_concat(x, emb):
    """x: [B, C, H, W], emb: [E, H, W]  ->  [B, C+E, H, W] (channel concat)."""
    B, C, H, W = x.shape
    E = emb.shape[0]
    chw, ehw = C * H * W, E * H * W
    # Lane-alignment guard: the unmasked-vst slab layout only holds when both
    # slabs are multiples of 128 lanes (true for 128*4*4 / 64*4*4).  Otherwise
    # a plain XLA-fused concatenate is cheaper than a masked-store kernel
    # launch for this tiny copy.
    # TODO(synk): the bigger structural win is fusing this concat into the
    # downstream Pallas consumer of the [B, C+E, H, W] tensor (no HBM round
    # trip); kept standalone here because there is no downstream kernel.
    if chw % 128 != 0 or ehw % 128 != 0:
        return jnp.concatenate(
            [x, jnp.broadcast_to(emb[None], (B, E, H, W))], axis=1)

    x_flat = x.reshape(B, chw)              # NCHW row-major flatten
    emb_flat = emb.reshape(1, ehw)
    out = pl.pallas_call(
        _spatial_concat_kernel,
        out_shape=jax.ShapeDtypeStruct((B, chw + ehw), x.dtype),
        grid_spec=pltpu.PrefetchScalarGridSpec(
            num_scalar_prefetch=0,
            grid=(1,),                      # whole problem (~44 KiB) in 1 step
            in_specs=[
                pl.BlockSpec((B, chw), lambda i: (0, 0)),
                pl.BlockSpec((1, ehw), lambda i: (0, 0)),
            ],
            out_specs=pl.BlockSpec((B, chw + ehw), lambda i: (0, 0)),
        ),
    )(x_flat, emb_flat)
    return out.reshape(B, C + E, H, W)


# ----------------------------------------------------------------------------
# Module wrapper (glue in plain JAX, hot path in Pallas)
# ----------------------------------------------------------------------------

class ResnetRGBEncoderPallas:
    """Pallas port of ResnetRGBEncoder (backbone='resnet50', baseplanes=32,
    output_size=256).

    For a 256x256 RGB observation the habitat ResNetEncoder output shape is
    (128, 4, 4); we exercise the forward's `rgb_features` branch (the cached-
    features path in the reference code) and run visual_fc / spatial concat
    as Pallas kernels.
    """

    def __init__(self, visual_encoder_output_shape=(128, 4, 4), output_size=256,
                 spatial_output=False, param_dtype=jnp.bfloat16,
                 key=jax.random.PRNGKey(0)):
        self.spatial_output = spatial_output
        self._feat_shape = tuple(visual_encoder_output_shape)
        c, h, w = self._feat_shape
        if not spatial_output:
            f_in = int(np.prod(self._feat_shape))
            self.output_shape = (output_size,)
            kw, kb = jax.random.split(key)
            bound = 1.0 / float(np.sqrt(f_in))
            # nn.Linear default init: U(-1/sqrt(fan_in), 1/sqrt(fan_in)).
            # Weight is kept transposed [F, OUT]; bf16 by default (kernel is
            # weight-bandwidth bound, MXU still accumulates in f32), f32 if
            # bit-parity with the PyTorch reference is required.
            self.fc_w_t = jax.random.uniform(
                kw, (f_in, output_size), jnp.float32, -bound, bound
            ).astype(param_dtype)
            self.fc_b = jax.random.uniform(
                kb, (1, output_size), jnp.float32, -bound, bound)
        else:
            self.embedding_dim = 64
            self.num_embeddings = h * w
            # nn.Embedding default init: N(0, 1)
            self.spatial_embeddings = jax.random.normal(
                key, (self.num_embeddings, self.embedding_dim), jnp.float32)
            self.output_shape = (c + self.embedding_dim, h, w)

    def __call__(self, observations):
        obs_rgb = observations["rgb"]
        if obs_rgb.ndim == 5:
            obs_rgb = obs_rgb.reshape(
                -1, obs_rgb.shape[2], obs_rgb.shape[3], obs_rgb.shape[4])
        if "rgb_features" in observations:
            x = observations["rgb_features"]
        else:
            # TODO(synk): the ResNet50 visual_encoder conv backbone is not
            # reimplemented here; supply precomputed observations['rgb_features'].
            raise NotImplementedError(
                "Pallas port requires observations['rgb_features'].")

        if self.spatial_output:
            b, c, h, w = x.shape
            # matches torch: embedding_table.view(1, -1, h, w) then expand+cat
            emb = self.spatial_embeddings.reshape(1, -1, h, w)[0]  # [64, h, w]
            return spatial_concat(x, emb)
        else:
            x_flat = x.reshape(x.shape[0], -1)   # Flatten (row-major == torch)
            return visual_fc(x_flat, self.fc_w_t, self.fc_b)


# ----------------------------------------------------------------------------
# Demo / check
# ----------------------------------------------------------------------------

if __name__ == "__main__":
    key = jax.random.PRNGKey(0)
    k_rgb, k_feat, k_enc, k_big = jax.random.split(key, 4)

    B = 2
    # raw rgb observation (forward only reshapes it; features are cached)
    rgb = jax.random.uniform(k_rgb, (B, 16, 16, 3), jnp.float32) * 255.0
    # visual_encoder output for resnet50 / baseplanes=32: (C, H, W) = (128, 4, 4)
    rgb_features = jax.random.normal(k_feat, (B, 128, 4, 4), jnp.float32)
    x_flat = rgb_features.reshape(B, -1)

    # ---- default path: Flatten -> Linear(2048, 256) -> ReLU (bf16 weights) ----
    enc = ResnetRGBEncoderPallas(key=k_enc)
    out = jax.block_until_ready(enc({"rgb": rgb, "rgb_features": rgb_features}))
    assert out.shape == (B, 256)
    ref = jnp.maximum(
        jnp.dot(x_flat.astype(jnp.bfloat16), enc.fc_w_t,
                preferred_element_type=jnp.float32) + enc.fc_b, 0.0)
    np.testing.assert_allclose(np.asarray(out), np.asarray(ref),
                               rtol=1e-2, atol=1e-2)

    # ---- f32-parity option (keeps weight in f32) ----
    enc32 = ResnetRGBEncoderPallas(param_dtype=jnp.float32, key=k_enc)
    out32 = jax.block_until_ready(
        enc32({"rgb": rgb, "rgb_features": rgb_features}))
    ref32 = jnp.maximum(jnp.dot(x_flat, enc32.fc_w_t) + enc32.fc_b, 0.0)
    np.testing.assert_allclose(np.asarray(out32), np.asarray(ref32),
                               rtol=1e-2, atol=1e-2)

    # ---- large-B path: row-tiled grid with resident weight ----
    Bb = 256
    xb = jax.random.normal(k_big, (Bb, 2048), jnp.float32)
    outb = jax.block_until_ready(
        visual_fc(xb, enc.fc_w_t, enc.fc_b, row_tile=128))
    refb = jnp.maximum(
        jnp.dot(xb.astype(jnp.bfloat16), enc.fc_w_t,
                preferred_element_type=jnp.float32) + enc.fc_b, 0.0)
    np.testing.assert_allclose(np.asarray(outb), np.asarray(refb),
                               rtol=1e-2, atol=1e-2)

    # ---- spatial_output path: channel-concat with spatial embeddings ----
    enc_sp = ResnetRGBEncoderPallas(spatial_output=True, key=k_enc)
    out_sp = jax.block_until_ready(
        enc_sp({"rgb": rgb, "rgb_features": rgb_features}))
    assert out_sp.shape == (B, 128 + 64, 4, 4)
    emb = enc_sp.spatial_embeddings.reshape(1, -1, 4, 4)
    ref_sp = jnp.concatenate(
        [rgb_features, jnp.broadcast_to(emb, (B, 64, 4, 4))], axis=1)
    np.testing.assert_allclose(np.asarray(out_sp), np.asarray(ref_sp),
                               rtol=1e-6, atol=1e-6)

    print("KERNEL_OK")
</pallas_src>

<mosaic_0001>
module attributes {stable_mosaic.version = 11 : i64} {
  func.func @_visual_fc_kernel(%arg0: i32, %arg1: memref<2x2048xf32, #tpu.memory_space<vmem>>, %arg2: memref<2048x256xbf16, #tpu.memory_space<vmem>>, %arg3: memref<1x256xf32, #tpu.memory_space<vmem>>, %arg4: memref<2x256xf32, #tpu.memory_space<vmem>>) attributes {dimension_semantics = [#tpu.dimension_semantics<parallel>], iteration_bounds = array<i64: 1>, scalar_prefetch = 0 : i64, scratch_operands = 0 : i64, tpu.core_type = #tpu.core_type<tc>, window_params = [{transform_indices = @transform_0, window_bounds = array<i64: 2, 2048>}, {pipeline_mode = #tpu.pipeline_mode<synchronous>, transform_indices = @transform_1, window_bounds = array<i64: 2048, 256>}, {pipeline_mode = #tpu.pipeline_mode<synchronous>, transform_indices = @transform_2, window_bounds = array<i64: 1, 256>}, {transform_indices = @transform_3, window_bounds = array<i64: 2, 256>}]} {
    %c0 = arith.constant 0 : index
    %c0_0 = arith.constant 0 : index
    %0 = vector.load %arg1[%c0, %c0_0] : memref<2x2048xf32, #tpu.memory_space<vmem>>, vector<2x2048xf32>
    %1 = arith.truncf %0 : vector<2x2048xf32> to vector<2x2048xbf16>
    %c0_1 = arith.constant 0 : index
    %c0_2 = arith.constant 0 : index
    %2 = vector.load %arg2[%c0_1, %c0_2] : memref<2048x256xbf16, #tpu.memory_space<vmem>>, vector<2048x256xbf16>
    %cst = arith.constant dense<0.000000e+00> : vector<2x256xf32>
    %3 = tpu.matmul %1, %2, %cst {dimension_numbers = #tpu.dot_dimension_numbers<[1], [0], [0], [1], [0, 0, 1, 1], [], []>} : vector<2x2048xbf16>, vector<2048x256xbf16>, vector<2x256xf32> -> vector<2x256xf32>
    %c0_3 = arith.constant 0 : index
    %c0_4 = arith.constant 0 : index
    %4 = vector.load %arg3[%c0_3, %c0_4] : memref<1x256xf32, #tpu.memory_space<vmem>>, vector<1x256xf32>
    %5 = vector.broadcast %4 : vector<1x256xf32> to vector<2x256xf32>
    %6 = arith.addf %3, %5 : vector<2x256xf32>
    %cst_5 = arith.constant 0.000000e+00 : f32
    %7 = vector.broadcast %cst_5 : f32 to vector<2x256xf32>
    %8 = arith.maximumf %6, %7 : vector<2x256xf32>
    %c0_6 = arith.constant 0 : index
    %c0_7 = arith.constant 0 : index
    %9 = vector.load %arg4[%c0_6, %c0_7] : memref<2x256xf32, #tpu.memory_space<vmem>>, vector<2x256xf32>
    tpu.vector_store %arg4[%c0_6, %c0_7], %8 {strides = array<i32>} : memref<2x256xf32, #tpu.memory_space<vmem>>, vector<2x256xf32>,
    return
  }
  func.func @transform_0(%arg0: i32) -> (i32, i32) {
    %c0_i32 = arith.constant 0 : i32
    %c0_i32_0 = arith.constant 0 : i32
    return %arg0, %c0_i32 : i32, i32
  }
  func.func @transform_1(%arg0: i32) -> (i32, i32) {
    %c0_i32 = arith.constant 0 : i32
    %c0_i32_0 = arith.constant 0 : i32
    %c0_i32_1 = arith.constant 0 : i32
    return %c0_i32, %c0_i32_0 : i32, i32
  }
  func.func @transform_2(%arg0: i32) -> (i32, i32) {
    %c0_i32 = arith.constant 0 : i32
    %c0_i32_0 = arith.constant 0 : i32
    %c0_i32_1 = arith.constant 0 : i32
    return %c0_i32, %c0_i32_0 : i32, i32
  }
  func.func @transform_3(%arg0: i32) -> (i32, i32) {
    %c0_i32 = arith.constant 0 : i32
    %c0_i32_0 = arith.constant 0 : i32
    return %arg0, %c0_i32 : i32, i32
  }
}

</mosaic_0001>

<bundles_post_ra>
// kernel: tpu_custom_call.1
= control target key start
LH: loop header
LB: loop body
LE: loop exit
PB: predicated region body
PF: predicated region fallthrough
CT: control target
= control target key end

     0   :  { %8 = vsyncpa [#allocation3], 0  ;;  %s2945_s0 = inlined_call_operand.hbm [shape: f32[2,2048], index: 0, kind: input, shape index: {}]   ;;  %s2946_s1 = inlined_call_operand.hbm [shape: bf16[2048,256], index: 1, kind: input, shape index: {}]   ;;  %s2947_s2 = inlined_call_operand.vmem [shape: f32[1,256], index: 2, kind: input, shape index: {}]   ;;  %s2948_s3 = inlined_call_operand.hbm [shape: f32[2,256], index: 3, kind: output, shape index: {}]  }
   0x1   :  { %9 = vsyncpa [#allocation6], 0 }
   0x2   :  { %10 = vsyncpa [#allocation4], 0  ;;  %s2806_s12 = smov [#allocation2]   ;;  %s2807_s14 = smov [#allocation5]  }
   0x3   :  { %s17_s13 = sshll.u32 %s2806_s12, 4  ;;  %s26_s15 = sshll.u32 %s2807_s14, 4  ;;  %s18_s13 = int_to_ptr.vmem [resolvable:$true] %s17_s13  ;;  %s2832_s15 = int_to_ptr.vmem [resolvable:$true] %s26_s15 }
   0x4   :  { %s2734_s18 = scalar_lea.hbm %s2945_s0, 512 }
   0x5   :  { %p2735_p0 = scmp.ne.s32.totalorder %s2945_s0, %s2734_s18  ;;  %p2738_p1 = scmp.lt.u32.totalorder %s2734_s18, %s2945_s0 }
   0x7   :  { %p2740_p2 = pnand %p2738_p1, %p2735_p0 }
   0x9   :  { %2743 = shalt.err (!%p2740_p2)
}
   0xa   :  { %s2744_s23 = scalar_lea.vmem %s18_s13, 512  ;;  %p2749_p4 = scmp.lt.s32.totalorder %s18_s13, %s18_s13 }
   0xb   :  { %p2745_p3 = scmp.ne.s32.totalorder %s18_s13, %s2744_s23  ;;  %p2750_p5 = scmp.lt.s32.totalorder %s2744_s23, %s2744_s23 }
   0xd   :  { %p2751_p6 = por %p2750_p5, %p2749_p4 }
   0xf   :  { %p2752_p7 = pnand %p2751_p6, %p2745_p3 }
  0x11   :  { %2755 = shalt.err (!%p2752_p7)
}
  0x12   :  { %20 = dma.hbm_to_vmem [thread:$0]  %s2945_s0, 512, %s18_s13, [#allocation3]  }
  0x13   :  { %s2756_s28 = scalar_lea.hbm %s2946_s1, 32768 }
  0x14   :  { %p2757_p8 = scmp.ne.s32.totalorder %s2946_s1, %s2756_s28  ;;  %p2760_p9 = scmp.lt.u32.totalorder %s2756_s28, %s2946_s1 }
  0x16   :  { %p2762_p10 = pnand %p2760_p9, %p2757_p8 }
  0x18   :  { %2765 = shalt.err (!%p2762_p10)
}
  0x19   :  { %s2766_s6 = scalar_lea.vmem %s2832_s15, 32768  ;;  %p2771_p12 = scmp.lt.s32.totalorder %s2832_s15, %s2832_s15 }
  0x1a   :  { %p2767_p11 = scmp.ne.s32.totalorder %s2832_s15, %s2766_s6  ;;  %p2772_p13 = scmp.lt.s32.totalorder %s2766_s6, %s2766_s6 }
  0x1c   :  { %p2773_p0 = por %p2772_p13, %p2771_p12 }
  0x1e   :  { %p2774_p1 = pnand %p2773_p0, %p2767_p11 }
  0x20   :  { %2777 = shalt.err (!%p2774_p1)
}
  0x21   :  { %s2808_s0 = smov 128   ;;  %s2809_s7 = smov 8  }
  0x22   :  { %32 = dma.hbm_to_vmem [thread:$0]  %s2946_s1, 32768, %s2832_s15, [#allocation6], %s2808_s0, %s2808_s0, %s2809_s7  }
  0x23   :  { %2800 = dma.done.wait [#allocation3], 512  }
  0x24   :  { %2801 = vsyncadd [#allocation3], 4294966784 }
  0x25   :  { %2802 = dma.done.wait [#allocation6], 32768  }
  0x26   :  { %2803 = vsyncadd [#allocation6], 4294934528  ;;  %v2346_v0 = vld [vmem:[#allocation5 + $0x4] ss:$8 sps:$4 sm:$0xff]   ;;  %v2350_v2 = vld [vmem:[#allocation5] ss:$8 sps:$4 sm:$0xff]   ;;  %v53_v38 = vlaneseq }
  0x27   :  { %v2348_v1 = vld [vmem:[#allocation5 + $0x404] ss:$8 sps:$4 sm:$0xff]   ;;  %1697 = vmatprep.subr.bf16.mxu1 %v2346_v0  ;;  %v2351_v3 = vld [vmem:[#allocation5 + $0x400] ss:$8 sps:$4 sm:$0xff]   ;;  %v2352_v4 = vld [vmem:[#allocation5 + $0x14] ss:$8 sps:$4 sm:$0xff]  }
  0x28   :  { %1861 = vmatprep.subr.bf16.mxu0 %v2348_v1  ;;  %1698 = vmatpush1.bf16.msra.mxu1 %v2350_v2  ;;  %v2354_v5 = vld [vmem:[#allocation5 + $0x414] ss:$8 sps:$4 sm:$0xff]   ;;  %v2356_v6 = vld [vmem:[#allocation5 + $0x10] ss:$8 sps:$4 sm:$0xff]   ;;  %v2358_v8 = vld [vmem:[#allocation5 + $0x24] ss:$8 sps:$4 sm:$0xff]  }
  0x29   :  { %1862 = vmatpush1.bf16.msra.mxu0 %v2351_v3  ;;  %1699 = vmatprep.subr.bf16.mxu1 %v2352_v4  ;;  %v2357_v7 = vld [vmem:[#allocation5 + $0x410] ss:$8 sps:$4 sm:$0xff]   ;;  %v2360_v9 = vld [vmem:[#allocation5 + $0x424] ss:$8 sps:$4 sm:$0xff]   ;;  %v2362_v10 = vld [vmem:[#allocation5 + $0x20] ss:$8 sps:$4 sm:$0xff]  }
  0x2a   :  { %1863 = vmatprep.subr.bf16.mxu0 %v2354_v5  ;;  %v2363_v11 = vld [vmem:[#allocation5 + $0x420] ss:$8 sps:$4 sm:$0xff]   ;;  %v2364_v12 = vld [vmem:[#allocation5 + $0x34] ss:$8 sps:$4 sm:$0xff]   ;;  %v2368_v14 = vld [vmem:[#allocation5 + $0x30] ss:$8 sps:$4 sm:$0xff]  }
  0x2b   :  { %v2366_v13 = vld [vmem:[#allocation5 + $0x434] ss:$8 sps:$4 sm:$0xff]   ;;  %v2369_v15 = vld [vmem:[#allocation5 + $0x430] ss:$8 sps:$4 sm:$0xff]   ;;  %v2370_v16 = vld [vmem:[#allocation5 + $0x44] ss:$8 sps:$4 sm:$0xff]  }
  0x2c   :  { %1700 = vmatpush1.bf16.msra.mxu1 %v2356_v6  ;;  %v2372_v17 = vld [vmem:[#allocation5 + $0x444] ss:$8 sps:$4 sm:$0xff]   ;;  %v2374_v18 = vld [vmem:[#allocation5 + $0x40] ss:$8 sps:$4 sm:$0xff]   ;;  %v2376_v20 = vld [vmem:[#allocation5 + $0x54] ss:$8 sps:$4 sm:$0xff]  }
  0x2d   :  { %1864 = vmatpush1.bf16.msra.mxu0 %v2357_v7  ;;  %1701 = vmatprep.subr.bf16.mxu1 %v2358_v8  ;;  %v2375_v19 = vld [vmem:[#allocation5 + $0x440] ss:$8 sps:$4 sm:$0xff]   ;;  %v2378_v21 = vld [vmem:[#allocation5 + $0x454] ss:$8 sps:$4 sm:$0xff]   ;;  %v2380_v22 = vld [vmem:[#allocation5 + $0x50] ss:$8 sps:$4 sm:$0xff]  }
  0x2e   :  { %1865 = vmatprep.subr.bf16.mxu0 %v2360_v9  ;;  %v2381_v23 = vld [vmem:[#allocation5 + $0x450] ss:$8 sps:$4 sm:$0xff]   ;;  %v2382_v24 = vld [vmem:[#allocation5 + $0x64] ss:$8 sps:$4 sm:$0xff]   ;;  %v2386_v26 = vld [vmem:[#allocation5 + $0x60] ss:$8 sps:$4 sm:$0xff]  }
  0x2f   :  { %v2384_v25 = vld [vmem:[#allocation5 + $0x464] ss:$8 sps:$4 sm:$0xff]   ;;  %v2387_v27 = vld [vmem:[#allocation5 + $0x460] ss:$8 sps:$4 sm:$0xff]   ;;  %v2388_v28 = vld [vmem:[#allocation5 + $0x74] ss:$8 sps:$4 sm:$0xff]  }
  0x30   :  { %1702 = vmatpush1.bf16.msra.mxu1 %v2362_v10  ;;  %v2390_v29 = vld [vmem:[#allocation5 + $0x474] ss:$8 sps:$4 sm:$0xff]   ;;  %v2392_v30 = vld [vmem:[#allocation5 + $0x70] ss:$8 sps:$4 sm:$0xff]   ;;  %v2394_v32 = vld [vmem:[#allocation5 + $0x84] ss:$8 sps:$4 sm:$0xff]  }
  0x31   :  { %1866 = vmatpush1.bf16.msra.mxu0 %v2363_v11  ;;  %1703 = vmatprep.subr.bf16.mxu1 %v2364_v12  ;;  %v2393_v31 = vld [vmem:[#allocation5 + $0x470] ss:$8 sps:$4 sm:$0xff]   ;;  %v2396_v33 = vld [vmem:[#allocation5 + $0x484] ss:$8 sps:$4 sm:$0xff]   ;;  %v2398_v34 = vld [vmem:[#allocation5 + $0x80] ss:$8 sps:$4 sm:$0xff]  }
  0x32   :  { %1867 = vmatprep.subr.bf16.mxu0 %v2366_v13  ;;  %v2399_v35 = vld [vmem:[#allocation5 + $0x480] ss:$8 sps:$4 sm:$0xff]   ;;  %v2810_v36 = vmov 1983009808   ;;  %v2400_v39 = vld [vmem:[#allocation5 + $0x94] ss:$8 sps:$4 sm:$0xff]  }
  0x33   :  { %v51_v37 = vunpack.c.l.s4 %v2810_v36  ;;  %v2402_v40 = vld [vmem:[#allocation5 + $0x494] ss:$8 sps:$4 sm:$0xff]   ;;  %v2404_v41 = vld [vmem:[#allocation5 + $0x90] ss:$8 sps:$4 sm:$0xff]   ;;  %v2863_v43 = vshrl.u32 %v53_v38, 7  ;;  %v41_v52 = vld [vmem:[#allocation2] sm:$0xff] }
  0x34   :  { %1704 = vmatpush1.bf16.msra.mxu1 %v2368_v14  ;;  %v2405_v44 = vld [vmem:[#allocation5 + $0x490] ss:$8 sps:$4 sm:$0xff]   ;;  %v2406_v45 = vld [vmem:[#allocation5 + $0xa4] ss:$8 sps:$4 sm:$0xff]   ;;  %v2410_v47 = vld [vmem:[#allocation5 + $0xa0] ss:$8 sps:$4 sm:$0xff]   ;;  %v49_v8 = vcombine.high %v41_v52, %v41_v52 }
  0x35   :  { %1868 = vmatpush1.bf16.msra.mxu0 %v2369_v15  ;;  %1705 = vmatprep.subr.bf16.mxu1 %v2370_v16  ;;  %v52_v42 = vunpack.c.0.s8 %v51_v37  ;;  %v2408_v46 = vld [vmem:[#allocation5 + $0x4a4] ss:$8 sps:$4 sm:$0xff]   ;;  %v2411_v48 = vld [vmem:[#allocation5 + $0x4a0] ss:$8 sps:$4 sm:$0xff]   ;;  %v2412_v50 = vld [vmem:[#allocation5 + $0xb4] ss:$8 sps:$4 sm:$0xff]  }
  0x36   :  { %1869 = vmatprep.subr.bf16.mxu0 %v2372_v17  ;;  %v2414_v51 = vld [vmem:[#allocation5 + $0x4b4] ss:$8 sps:$4 sm:$0xff]   ;;  %v2416_v53 = vld [vmem:[#allocation5 + $0xb0] ss:$8 sps:$4 sm:$0xff]   ;;  %v2418_v57 = vld [vmem:[#allocation5 + $0xc4] ss:$8 sps:$4 sm:$0xff]  }
  0x37   :  { %v2866_v49 = vsub.s32 %v52_v42, %v2863_v43  ;;  %v2417_v55 = vld [vmem:[#allocation5 + $0x4b0] ss:$8 sps:$4 sm:$0xff]   ;;  %v2420_v58 = vld [vmem:[#allocation5 + $0x4c4] ss:$8 sps:$4 sm:$0xff]   ;;  %v2422_v63 = vld [vmem:[#allocation5 + $0xc0] ss:$8 sps:$4 sm:$0xff]  }
  0x38   :  { %1706 = vmatpush1.bf16.msra.mxu1 %v2374_v18  ;;  %v43_v56 = vld [vmem:[#allocation2 + $0x10] sm:$0xff]  ;;  %v2423_v0 = vld [vmem:[#allocation5 + $0x4c0] ss:$8 sps:$4 sm:$0xff]   ;;  %v2430_v6 = vld [vmem:[#allocation5 + $0xe4] ss:$8 sps:$4 sm:$0xff]   ;;  %s2811_s11 = smov [#allocation7]  }
  0x39   :  { %1870 = vmatpush1.bf16.msra.mxu0 %v2375_v19  ;;  %1707 = vmatprep.subr.bf16.mxu1 %v2376_v20  ;;  %v2869_v54 = vrot.slane %v41_v52, %v2866_v49  ;;  %v90_v60 = vrot.slane %v43_v56, %v2866_v49  ;;  %v2424_v1 = vld [vmem:[#allocation5 + $0xd4] ss:$8 sps:$4 sm:$0xff]   ;;  %v2428_v4 = vld [vmem:[#allocation5 + $0xd0] ss:$8 sps:$4 sm:$0xff]   ;;  %v2432_v7 = vld [vmem:[#allocation5 + $0x4e4] ss:$8 sps:$4 sm:$0xff]   ;;  %v83_v9 = vcombine.high %v43_v56, %v43_v56 }
  0x3a   :  { %1871 = vmatprep.subr.bf16.mxu0 %v2378_v21  ;;  %v2426_v2 = vld [vmem:[#allocation5 + $0x4d4] ss:$8 sps:$4 sm:$0xff]   ;;  %v2429_v5 = vld [vmem:[#allocation5 + $0x4d0] ss:$8 sps:$4 sm:$0xff]   ;;  %v2434_v10 = vld [vmem:[#allocation5 + $0xe0] ss:$8 sps:$4 sm:$0xff]   ;;  %v2875_v14 = vrot.slane %v49_v8, %v2866_v49 }
  0x3b   :  { %v64_v59 = vcombine.high %v2869_v54, %v2869_v54  ;;  %v98_v62 = vcombine.high %v90_v60, %v90_v60  ;;  %v2435_v11 = vld [vmem:[#allocation5 + $0x4e0] ss:$8 sps:$4 sm:$0xff]   ;;  %v2436_v12 = vld [vmem:[#allocation5 + $0xf4] ss:$8 sps:$4 sm:$0xff]   ;;  %v2878_v15 = vrot.slane %v83_v9, %v2866_v49  ;;  %v2440_v16 = vld [vmem:[#allocation5 + $0xf0] ss:$8 sps:$4 sm:$0xff]  }
  0x3c   :  { %1708 = vmatpush1.bf16.msra.mxu1 %v2380_v22  ;;  %v2438_v13 = vld [vmem:[#allocation5 + $0x4f4] ss:$8 sps:$4 sm:$0xff]   ;;  %v2441_v17 = vld [vmem:[#allocation5 + $0x4f0] ss:$8 sps:$4 sm:$0xff]   ;;  %v2445_v18 = vld [vmem:[#allocation5 + $0x104] ss:$8 sps:$4 sm:$0xff]   ;;  %v65_v20 = vcombine.high %v2875_v14, %v2875_v14  ;;  %v133_v22 = vpack.c.bf16 %v2869_v54, %v2869_v54 }
  0x3d   :  { %1872 = vmatpush1.bf16.msra.mxu0 %v2381_v23  ;;  %1709 = vmatprep.subr.bf16.mxu1 %v2382_v24  ;;  %v134_v61 = vpack.c.bf16 %v64_v59, %v64_v59  ;;  %v142_v3 = vpack.c.bf16 %v98_v62, %v98_v62  ;;  %v2449_v19 = vld [vmem:[#allocation5 + $0x504] ss:$8 sps:$4 sm:$0xff]   ;;  %v99_v21 = vcombine.high %v2878_v15, %v2878_v15  ;;  %v2443_v24 = vld [vmem:[#allocation5 + $0x100] ss:$8 sps:$4 sm:$0xff]   ;;  %v2464_v36 = vld [vmem:[#allocation5 + $0x134] ss:$8 sps:$4 sm:$0xff]  }
  0x3e   :  { %1873 = vmatprep.subr.bf16.mxu0 %v2384_v25  ;;  %v141_v23 = vpack.c.bf16 %v90_v60, %v90_v60  ;;  %v2447_v25 = vld [vmem:[#allocation5 + $0x500] ss:$8 sps:$4 sm:$0xff]   ;;  %v2467_v37 = vld [vmem:[#allocation5 + $0x534] ss:$8 sps:$4 sm:$0xff]   ;;  %v2462_v38 = vld [vmem:[#allocation5 + $0x130] ss:$8 sps:$4 sm:$0xff]  }
  0x3f   :  { %1729 = vmatprep.mubr.bf16.mxu1 %v134_v61  ;;  %1893 = vmatprep.mubr.bf16.mxu0 %v142_v3  ;;  %v2468_v42 = vld [vmem:[#allocation5 + $0x140] ss:$8 sps:$4 sm:$0xff]   ;;  %v2488_v54 = vld [vmem:[#allocation5 + $0x174] ss:$8 sps:$4 sm:$0xff]   ;;  %v2486_v56 = vld [vmem:[#allocation5 + $0x170] ss:$8 sps:$4 sm:$0xff]  }
  0x40   :  { %1710 = vmatpush1.bf16.msra.mxu1 %v2386_v26  ;;  %v2452_v26 = vld [vmem:[#allocation5 + $0x114] ss:$8 sps:$4 sm:$0xff]   ;;  %v2480_v52 = vld [vmem:[#allocation5 + $0x160] ss:$8 sps:$4 sm:$0xff]   ;;  %v2497_v59 = vld [vmem:[#allocation5 + $0x584] ss:$8 sps:$4 sm:$0xff]  }
  0x41   :  { %1874 = vmatpush1.bf16.msra.mxu0 %v2387_v27  ;;  %1711 = vmatprep.subr.bf16.mxu1 %v2388_v28  ;;  %v2455_v27 = vld [vmem:[#allocation5 + $0x514] ss:$8 sps:$4 sm:$0xff]   ;;  %v136_v28 = vpack.c.bf16 %v65_v20, %v65_v20  ;;  %v2492_v60 = vld [vmem:[#allocation5 + $0x180] ss:$8 sps:$4 sm:$0xff]   ;;  %v2509_v3 = vld [vmem:[#allocation5 + $0x5a4] ss:$8 sps:$4 sm:$0xff]  }
  0x42   :  { %1875 = vmatprep.subr.bf16.mxu0 %v2390_v29  ;;  %v144_v29 = vpack.c.bf16 %v99_v21, %v99_v21  ;;  %v2495_v61 = vld [vmem:[#allocation5 + $0x580] ss:$8 sps:$4 sm:$0xff]   ;;  %v2500_v62 = vld [vmem:[#allocation5 + $0x194] ss:$8 sps:$4 sm:$0xff]   ;;  %v2510_v8 = vld [vmem:[#allocation5 + $0x1b0] ss:$8 sps:$4 sm:$0xff]  }
  0x43   :  { %v2513_v9 = vld [vmem:[#allocation5 + $0x5b0] ss:$8 sps:$4 sm:$0xff]   ;;  %v2530_v20 = vld [vmem:[#allocation5 + $0x1e4] ss:$8 sps:$4 sm:$0xff]   ;;  %s2045_s12 = sshll.u32 %s2811_s11, 4  ;;  %s2046_s12 = int_to_ptr.vmem [resolvable:$true] %s2045_s12 }
  0x44   :  { %1712 = vmatpush1.bf16.msra.mxu1 %v2392_v30  ;;  %v2450_v30 = vld [vmem:[#allocation5 + $0x110] ss:$8 sps:$4 sm:$0xff]   ;;  %v2533_v21 = vld [vmem:[#allocation5 + $0x5e4] ss:$8 sps:$4 sm:$0xff]   ;;  %p2783_p3 = scmp.lt.s32.totalorder %s2046_s12, %s2046_s12 }
  0x45   :  { %1876 = vmatpush1.bf16.msra.mxu0 %v2393_v31  ;;  %1713 = vmatprep.subr.bf16.mxu1 %v2394_v32  ;;  %v2453_v31 = vld [vmem:[#allocation5 + $0x510] ss:$8 sps:$4 sm:$0xff]   ;;  %v2458_v32 = vld [vmem:[#allocation5 + $0x124] ss:$8 sps:$4 sm:$0xff]  }
  0x46   :  { %1877 = vmatprep.subr.bf16.mxu0 %v2396_v33  ;;  %v2461_v33 = vld [vmem:[#allocation5 + $0x524] ss:$8 sps:$4 sm:$0xff]  }
  0x48   :  { %1714 = vmatpush1.bf16.msra.mxu1 %v2398_v34  ;;  %v2456_v34 = vld [vmem:[#allocation5 + $0x120] ss:$8 sps:$4 sm:$0xff]  }
  0x49   :  { %1878 = vmatpush1.bf16.msra.mxu0 %v2399_v35  ;;  %1715 = vmatprep.subr.bf16.mxu1 %v2400_v39  ;;  %v2459_v35 = vld [vmem:[#allocation5 + $0x520] ss:$8 sps:$4 sm:$0xff]   ;;  %v2465_v39 = vld [vmem:[#allocation5 + $0x530] ss:$8 sps:$4 sm:$0xff]  }
  0x4a   :  { %1879 = vmatprep.subr.bf16.mxu0 %v2402_v40  ;;  %v2470_v40 = vld [vmem:[#allocation5 + $0x144] ss:$8 sps:$4 sm:$0xff]  }
  0x4c   :  { %1716 = vmatpush1.bf16.msra.mxu1 %v2404_v41  ;;  %v2473_v41 = vld [vmem:[#allocation5 + $0x544] ss:$8 sps:$4 sm:$0xff]  }
  0x4d   :  { %1880 = vmatpush1.bf16.msra.mxu0 %v2405_v44  ;;  %1717 = vmatprep.subr.bf16.mxu1 %v2406_v45  ;;  %v2471_v44 = vld [vmem:[#allocation5 + $0x540] ss:$8 sps:$4 sm:$0xff]   ;;  %v2476_v45 = vld [vmem:[#allocation5 + $0x154] ss:$8 sps:$4 sm:$0xff]  }
  0x4e   :  { %1881 = vmatprep.subr.bf16.mxu0 %v2408_v46  ;;  %v2479_v46 = vld [vmem:[#allocation5 + $0x554] ss:$8 sps:$4 sm:$0xff]  }
  0x50   :  { %1718 = vmatpush1.bf16.msra.mxu1 %v2410_v47  ;;  %v2474_v47 = vld [vmem:[#allocation5 + $0x150] ss:$8 sps:$4 sm:$0xff]  }
  0x51   :  { %1882 = vmatpush1.bf16.msra.mxu0 %v2411_v48  ;;  %1719 = vmatprep.subr.bf16.mxu1 %v2412_v50  ;;  %v2477_v48 = vld [vmem:[#allocation5 + $0x550] ss:$8 sps:$4 sm:$0xff]   ;;  %v2482_v50 = vld [vmem:[#allocation5 + $0x164] ss:$8 sps:$4 sm:$0xff]  }
  0x52   :  { %1883 = vmatprep.subr.bf16.mxu0 %v2414_v51  ;;  %v2485_v51 = vld [vmem:[#allocation5 + $0x564] ss:$8 sps:$4 sm:$0xff]  }
  0x54   :  { %1720 = vmatpush1.bf16.msra.mxu1 %v2416_v53  ;;  %v2483_v53 = vld [vmem:[#allocation5 + $0x560] ss:$8 sps:$4 sm:$0xff]  }
  0x55   :  { %1884 = vmatpush1.bf16.msra.mxu0 %v2417_v55  ;;  %1721 = vmatprep.subr.bf16.mxu1 %v2418_v57  ;;  %v2491_v55 = vld [vmem:[#allocation5 + $0x574] ss:$8 sps:$4 sm:$0xff]   ;;  %v2489_v57 = vld [vmem:[#allocation5 + $0x570] ss:$8 sps:$4 sm:$0xff]  }
  0x56   :  { %1885 = vmatprep.subr.bf16.mxu0 %v2420_v58  ;;  %v2494_v58 = vld [vmem:[#allocation5 + $0x184] ss:$8 sps:$4 sm:$0xff]  }
  0x58   :  { %1722 = vmatpush1.bf16.msra.mxu1 %v2422_v63  ;;  %v2503_v63 = vld [vmem:[#allocation5 + $0x594] ss:$8 sps:$4 sm:$0xff]  }
  0x59   :  { %1886 = vmatpush1.bf16.msra.mxu0 %v2423_v0  ;;  %1723 = vmatprep.subr.bf16.mxu1 %v2424_v1  ;;  %v2498_v0 = vld [vmem:[#allocation5 + $0x190] ss:$8 sps:$4 sm:$0xff]  }
  0x5a   :  { %1887 = vmatprep.subr.bf16.mxu0 %v2426_v2  ;;  %v2501_v1 = vld [vmem:[#allocation5 + $0x590] ss:$8 sps:$4 sm:$0xff]   ;;  %v2506_v2 = vld [vmem:[#allocation5 + $0x1a4] ss:$8 sps:$4 sm:$0xff]  }
  0x5c   :  { %1724 = vmatpush1.bf16.msra.mxu1 %v2428_v4  ;;  %v2504_v4 = vld [vmem:[#allocation5 + $0x1a0] ss:$8 sps:$4 sm:$0xff]  }
  0x5d   :  { %1888 = vmatpush1.bf16.msra.mxu0 %v2429_v5  ;;  %1725 = vmatprep.subr.bf16.mxu1 %v2430_v6  ;;  %v2507_v5 = vld [vmem:[#allocation5 + $0x5a0] ss:$8 sps:$4 sm:$0xff]   ;;  %v2512_v6 = vld [vmem:[#allocation5 + $0x1b4] ss:$8 sps:$4 sm:$0xff]  }
  0x5e   :  { %1889 = vmatprep.subr.bf16.mxu0 %v2432_v7  ;;  %v2515_v7 = vld [vmem:[#allocation5 + $0x5b4] ss:$8 sps:$4 sm:$0xff]  }
  0x60   :  { %1726 = vmatpush1.bf16.msra.mxu1 %v2434_v10  ;;  %v2518_v10 = vld [vmem:[#allocation5 + $0x1c4] ss:$8 sps:$4 sm:$0xff]  }
  0x61   :  { %1890 = vmatpush1.bf16.msra.mxu0 %v2435_v11  ;;  %1727 = vmatprep.subr.bf16.mxu1 %v2436_v12  ;;  %v2521_v11 = vld [vmem:[#allocation5 + $0x5c4] ss:$8 sps:$4 sm:$0xff]   ;;  %v2516_v12 = vld [vmem:[#allocation5 + $0x1c0] ss:$8 sps:$4 sm:$0xff]  }
  0x62   :  { %1891 = vmatprep.subr.bf16.mxu0 %v2438_v13  ;;  %v2519_v13 = vld [vmem:[#allocation5 + $0x5c0] ss:$8 sps:$4 sm:$0xff]  }
  0x64   :  { %1728 = vmatpush1.bf16.msra.mxu1 %v2440_v16  ;;  %v2524_v16 = vld [vmem:[#allocation5 + $0x1d4] ss:$8 sps:$4 sm:$0xff]  }
  0x65   :  { %1892 = vmatpush1.bf16.msra.mxu0 %v2441_v17  ;;  %1738 = vmatprep.subr.bf16.mxu1 %v2445_v18  ;;  %v2527_v17 = vld [vmem:[#allocation5 + $0x5d4] ss:$8 sps:$4 sm:$0xff]   ;;  %v2522_v18 = vld [vmem:[#allocation5 + $0x1d0] ss:$8 sps:$4 sm:$0xff]  }
  0x66   :  { %1902 = vmatprep.subr.bf16.mxu0 %v2449_v19  ;;  %v2525_v19 = vld [vmem:[#allocation5 + $0x5d0] ss:$8 sps:$4 sm:$0xff]  }
  0x67   :  { %1730 = vmatmul.mubr.bf16.vlgmr.msra.gmra.mrb[0].mxu1 %v133_v22  ;;  %v2528_v22 = vld [vmem:[#allocation5 + $0x1e0] ss:$8 sps:$4 sm:$0xff]  }
  0x68   :  { %1894 = vmatmul.mubr.bf16.vlgmr.msra.gmra.mrb[0].mxu0 %v141_v23  ;;  %1739 = vmatpush1.bf16.msra.mxu1 %v2443_v24  ;;  %v2531_v23 = vld [vmem:[#allocation5 + $0x5e0] ss:$8 sps:$4 sm:$0xff]   ;;  %v2536_v24 = vld [vmem:[#allocation5 + $0x1f4] ss:$8 sps:$4 sm:$0xff]  }
  0x69   :  { %1903 = vmatpush1.bf16.msra.mxu0 %v2447_v25  ;;  %1740 = vmatprep.subr.bf16.mxu1 %v2452_v26  ;;  %v2539_v25 = vld [vmem:[#allocation5 + $0x5f4] ss:$8 sps:$4 sm:$0xff]   ;;  %v2534_v26 = vld [vmem:[#allocation5 + $0x1f0] ss:$8 sps:$4 sm:$0xff]  }
  0x6a   :  { %1904 = vmatprep.subr.bf16.mxu0 %v2455_v27  ;;  %1770 = vmatprep.mubr.bf16.mxu1 %v136_v28  ;;  %v2537_v27 = vld [vmem:[#allocation5 + $0x5f0] ss:$8 sps:$4 sm:$0xff]   ;;  %v2542_v28 = vld [vmem:[#allocation5 + $0x204] ss:$8 sps:$4 sm:$0xff]  }
  0x6b   :  { %1934 = vmatprep.mubr.bf16.mxu0 %v144_v29  ;;  %v2545_v29 = vld [vmem:[#allocation5 + $0x604] ss:$8 sps:$4 sm:$0xff]  }
  0x6c   :  { %1741 = vmatpush1.bf16.msra.mxu1 %v2450_v30  ;;  %v2540_v30 = vld [vmem:[#allocation5 + $0x200] ss:$8 sps:$4 sm:$0xff]  }
  0x6d   :  { %1905 = vmatpush1.bf16.msra.mxu0 %v2453_v31  ;;  %1742 = vmatprep.subr.bf16.mxu1 %v2458_v32  ;;  %v135_v31 = vpack.c.bf16 %v2875_v14, %v2875_v14  ;;  %v143_v32 = vpack.c.bf16 %v2878_v15, %v2878_v15  ;;  %v2546_v14 = vld [vmem:[#allocation5 + $0x210] ss:$8 sps:$4 sm:$0xff]  }
  0x6e   :  { %1906 = vmatprep.subr.bf16.mxu0 %v2461_v33  ;;  %v2543_v33 = vld [vmem:[#allocation5 + $0x600] ss:$8 sps:$4 sm:$0xff]  }
  0x70   :  { %1743 = vmatpush1.bf16.msra.mxu1 %v2456_v34  ;;  %v2548_v34 = vld [vmem:[#allocation5 + $0x214] ss:$8 sps:$4 sm:$0xff]  }
  0x71   :  { %1907 = vmatpush1.bf16.msra.mxu0 %v2459_v35  ;;  %1744 = vmatprep.subr.bf16.mxu1 %v2464_v36  ;;  %v2890_v35 = vld [vmem:[#allocation2 + $0x8] sm:$0xff]  ;;  %v2551_v36 = vld [vmem:[#allocation5 + $0x614] ss:$8 sps:$4 sm:$0xff]  }
  0x72   :  { %1908 = vmatprep.subr.bf16.mxu0 %v2467_v37  ;;  %v2894_v37 = vrot.slane %v2890_v35, %v2866_v49 }
  0x74   :  { %1745 = vmatpush1.bf16.msra.mxu1 %v2462_v38  ;;  %v2896_v38 = vld [vmem:[#allocation2 + $0x18] sm:$0xff]  ;;  %v81_v15 = vcombine.high %v2894_v37, %v2894_v37 }
  0x75   :  { %1909 = vmatpush1.bf16.msra.mxu0 %v2465_v39  ;;  %1746 = vmatprep.subr.bf16.mxu1 %v2470_v40  ;;  %v2549_v39 = vld [vmem:[#allocation5 + $0x610] ss:$8 sps:$4 sm:$0xff]   ;;  %v2902_v40 = vrot.slane %v2896_v38, %v2866_v49 }
  0x76   :  { %1910 = vmatprep.subr.bf16.mxu0 %v2473_v41  ;;  %v2554_v41 = vld [vmem:[#allocation5 + $0x224] ss:$8 sps:$4 sm:$0xff]  }
  0x78   :  { %1747 = vmatpush1.bf16.msra.mxu1 %v2468_v42  ;;  %v2557_v42 = vld [vmem:[#allocation5 + $0x624] ss:$8 sps:$4 sm:$0xff]  }
  0x79   :  { %1911 = vmatpush1.bf16.msra.mxu0 %v2471_v44  ;;  %1748 = vmatprep.subr.bf16.mxu1 %v2476_v45  ;;  %v138_v44 = vpack.c.bf16 %v81_v15, %v81_v15  ;;  %v115_v45 = vcombine.high %v2902_v40, %v2902_v40  ;;  %v2632_v15 = vld [vmem:[#allocation5 + $0x2f4] ss:$8 sps:$4 sm:$0xff]  }
  0x7a   :  { %1912 = vmatprep.subr.bf16.mxu0 %v2479_v46  ;;  %v2552_v46 = vld [vmem:[#allocation5 + $0x220] ss:$8 sps:$4 sm:$0xff]  }
  0x7c   :  { %1749 = vmatpush1.bf16.msra.mxu1 %v2474_v47  ;;  %v2555_v47 = vld [vmem:[#allocation5 + $0x620] ss:$8 sps:$4 sm:$0xff]  }
  0x7d   :  { %1913 = vmatpush1.bf16.msra.mxu0 %v2477_v48  ;;  %1750 = vmatprep.subr.bf16.mxu1 %v2482_v50  ;;  %v146_v48 = vpack.c.bf16 %v115_v45, %v115_v45  ;;  %v2560_v50 = vld [vmem:[#allocation5 + $0x234] ss:$8 sps:$4 sm:$0xff]   ;;  %v2633_v45 = vld [vmem:[#allocation5 + $0x6f0] ss:$8 sps:$4 sm:$0xff]  }
  0x7e   :  { %1914 = vmatprep.subr.bf16.mxu0 %v2485_v51  ;;  %v2563_v51 = vld [vmem:[#allocation5 + $0x634] ss:$8 sps:$4 sm:$0xff]  }
  0x80   :  { %1751 = vmatpush1.bf16.msra.mxu1 %v2480_v52  ;;  %v2558_v52 = vld [vmem:[#allocation5 + $0x230] ss:$8 sps:$4 sm:$0xff]  }
  0x81   :  { %1915 = vmatpush1.bf16.msra.mxu0 %v2483_v53  ;;  %1752 = vmatprep.subr.bf16.mxu1 %v2488_v54  ;;  %v2561_v53 = vld [vmem:[#allocation5 + $0x630] ss:$8 sps:$4 sm:$0xff]   ;;  %v2566_v54 = vld [vmem:[#allocation5 + $0x244] ss:$8 sps:$4 sm:$0xff]  }
  0x82   :  { %1916 = vmatprep.subr.bf16.mxu0 %v2491_v55  ;;  %v2569_v55 = vld [vmem:[#allocation5 + $0x644] ss:$8 sps:$4 sm:$0xff]  }
  0x84   :  { %1753 = vmatpush1.bf16.msra.mxu1 %v2486_v56  ;;  %v2564_v56 = vld [vmem:[#allocation5 + $0x240] ss:$8 sps:$4 sm:$0xff]  }
  0x85   :  { %1917 = vmatpush1.bf16.msra.mxu0 %v2489_v57  ;;  %1754 = vmatprep.subr.bf16.mxu1 %v2494_v58  ;;  %v2567_v57 = vld [vmem:[#allocation5 + $0x640] ss:$8 sps:$4 sm:$0xff]   ;;  %v2572_v58 = vld [vmem:[#allocation5 + $0x254] ss:$8 sps:$4 sm:$0xff]  }
  0x86   :  { %1918 = vmatprep.subr.bf16.mxu0 %v2497_v59  ;;  %v2575_v59 = vld [vmem:[#allocation5 + $0x654] ss:$8 sps:$4 sm:$0xff]  }
  0x88   :  { %1755 = vmatpush1.bf16.msra.mxu1 %v2492_v60  ;;  %v2570_v60 = vld [vmem:[#allocation5 + $0x250] ss:$8 sps:$4 sm:$0xff]  }
  0x89   :  { %1919 = vmatpush1.bf16.msra.mxu0 %v2495_v61  ;;  %1756 = vmatprep.subr.bf16.mxu1 %v2500_v62  ;;  %v2573_v61 = vld [vmem:[#allocation5 + $0x650] ss:$8 sps:$4 sm:$0xff]   ;;  %v2578_v62 = vld [vmem:[#allocation5 + $0x264] ss:$8 sps:$4 sm:$0xff]  }
  0x8a   :  { %1920 = vmatprep.subr.bf16.mxu0 %v2503_v63  ;;  %v2581_v63 = vld [vmem:[#allocation5 + $0x664] ss:$8 sps:$4 sm:$0xff]  }
  0x8c   :  { %1757 = vmatpush1.bf16.msra.mxu1 %v2498_v0  ;;  %v2576_v0 = vld [vmem:[#allocation5 + $0x260] ss:$8 sps:$4 sm:$0xff]  }
  0x8d   :  { %1921 = vmatpush1.bf16.msra.mxu0 %v2501_v1  ;;  %1758 = vmatprep.subr.bf16.mxu1 %v2506_v2  ;;  %v2579_v1 = vld [vmem:[#allocation5 + $0x660] ss:$8 sps:$4 sm:$0xff]   ;;  %v2584_v2 = vld [vmem:[#allocation5 + $0x274] ss:$8 sps:$4 sm:$0xff]  }
  0x8e   :  { %1922 = vmatprep.subr.bf16.mxu0 %v2509_v3  ;;  %v2587_v3 = vld [vmem:[#allocation5 + $0x674] ss:$8 sps:$4 sm:$0xff]  }
  0x90   :  { %1759 = vmatpush1.bf16.msra.mxu1 %v2504_v4  ;;  %v2582_v4 = vld [vmem:[#allocation5 + $0x270] ss:$8 sps:$4 sm:$0xff]  }
  0x91   :  { %1923 = vmatpush1.bf16.msra.mxu0 %v2507_v5  ;;  %1760 = vmatprep.subr.bf16.mxu1 %v2512_v6  ;;  %v2585_v5 = vld [vmem:[#allocation5 + $0x670] ss:$8 sps:$4 sm:$0xff]   ;;  %v2590_v6 = vld [vmem:[#allocation5 + $0x284] ss:$8 sps:$4 sm:$0xff]  }
  0x92   :  { %1924 = vmatprep.subr.bf16.mxu0 %v2515_v7  ;;  %v2593_v7 = vld [vmem:[#allocation5 + $0x684] ss:$8 sps:$4 sm:$0xff]  }
  0x94   :  { %1761 = vmatpush1.bf16.msra.mxu1 %v2510_v8  ;;  %v2588_v8 = vld [vmem:[#allocation5 + $0x280] ss:$8 sps:$4 sm:$0xff]  }
  0x95   :  { %1925 = vmatpush1.bf16.msra.mxu0 %v2513_v9  ;;  %1762 = vmatprep.subr.bf16.mxu1 %v2518_v10  ;;  %v2591_v9 = vld [vmem:[#allocation5 + $0x680] ss:$8 sps:$4 sm:$0xff]   ;;  %v2596_v10 = vld [vmem:[#allocation5 + $0x294] ss:$8 sps:$4 sm:$0xff]  }
  0x96   :  { %1926 = vmatprep.subr.bf16.mxu0 %v2521_v11  ;;  %v2599_v11 = vld [vmem:[#allocation5 + $0x694] ss:$8 sps:$4 sm:$0xff]  }
  0x98   :  { %1763 = vmatpush1.bf16.msra.mxu1 %v2516_v12  ;;  %v2594_v12 = vld [vmem:[#allocation5 + $0x290] ss:$8 sps:$4 sm:$0xff]  }
  0x99   :  { %1927 = vmatpush1.bf16.msra.mxu0 %v2519_v13  ;;  %1764 = vmatprep.subr.bf16.mxu1 %v2524_v16  ;;  %v2597_v13 = vld [vmem:[#allocation5 + $0x690] ss:$8 sps:$4 sm:$0xff]   ;;  %v2602_v16 = vld [vmem:[#allocation5 + $0x2a4] ss:$8 sps:$4 sm:$0xff]  }
  0x9a   :  { %1928 = vmatprep.subr.bf16.mxu0 %v2527_v17  ;;  %v2605_v17 = vld [vmem:[#allocation5 + $0x6a4] ss:$8 sps:$4 sm:$0xff]  }
  0x9c   :  { %1765 = vmatpush1.bf16.msra.mxu1 %v2522_v18  ;;  %v2600_v18 = vld [vmem:[#allocation5 + $0x2a0] ss:$8 sps:$4 sm:$0xff]  }
  0x9d   :  { %1929 = vmatpush1.bf16.msra.mxu0 %v2525_v19  ;;  %1766 = vmatprep.subr.bf16.mxu1 %v2530_v20  ;;  %v2603_v19 = vld [vmem:[#allocation5 + $0x6a0] ss:$8 sps:$4 sm:$0xff]   ;;  %v2608_v20 = vld [vmem:[#allocation5 + $0x2b4] ss:$8 sps:$4 sm:$0xff]  }
  0x9e   :  { %1930 = vmatprep.subr.bf16.mxu0 %v2533_v21  ;;  %v2611_v21 = vld [vmem:[#allocation5 + $0x6b4] ss:$8 sps:$4 sm:$0xff]  }
  0xa0   :  { %1767 = vmatpush1.bf16.msra.mxu1 %v2528_v22  ;;  %v2606_v22 = vld [vmem:[#allocation5 + $0x2b0] ss:$8 sps:$4 sm:$0xff]  }
  0xa1   :  { %1931 = vmatpush1.bf16.msra.mxu0 %v2531_v23  ;;  %1768 = vmatprep.subr.bf16.mxu1 %v2536_v24  ;;  %v2609_v23 = vld [vmem:[#allocation5 + $0x6b0] ss:$8 sps:$4 sm:$0xff]   ;;  %v2614_v24 = vld [vmem:[#allocation5 + $0x2c4] ss:$8 sps:$4 sm:$0xff]  }
  0xa2   :  { %1932 = vmatprep.subr.bf16.mxu0 %v2539_v25  ;;  %v2617_v25 = vld [vmem:[#allocation5 + $0x6c4] ss:$8 sps:$4 sm:$0xff]  }
  0xa4   :  { %1769 = vmatpush1.bf16.msra.mxu1 %v2534_v26  ;;  %v2612_v26 = vld [vmem:[#allocation5 + $0x2c0] ss:$8 sps:$4 sm:$0xff]  }
  0xa5   :  { %1933 = vmatpush1.bf16.msra.mxu0 %v2537_v27  ;;  %1779 = vmatprep.subr.bf16.mxu1 %v2542_v28  ;;  %v2615_v27 = vld [vmem:[#allocation5 + $0x6c0] ss:$8 sps:$4 sm:$0xff]   ;;  %v2620_v28 = vld [vmem:[#allocation5 + $0x2d4] ss:$8 sps:$4 sm:$0xff]  }
  0xa6   :  { %1943 = vmatprep.subr.bf16.mxu0 %v2545_v29  ;;  %v2623_v29 = vld [vmem:[#allocation5 + $0x6d4] ss:$8 sps:$4 sm:$0xff]  }
  0xa7   :  { %1771 = vmatmul.mubr.bf16.vlgmr.msra.gmra.mrb[0].mxu1 %v135_v31  ;;  %v2621_v31 = vld [vmem:[#allocation5 + $0x6d0] ss:$8 sps:$4 sm:$0xff]  }
  0xa8   :  { %1935 = vmatmul.mubr.bf16.vlgmr.msra.gmra.mrb[0].mxu0 %v143_v32  ;;  %1780 = vmatpush1.bf16.msra.mxu1 %v2540_v30  ;;  %v2618_v30 = vld [vmem:[#allocation5 + $0x2d0] ss:$8 sps:$4 sm:$0xff]   ;;  %v2626_v32 = vld [vmem:[#allocation5 + $0x2e4] ss:$8 sps:$4 sm:$0xff]  }
  0xa9   :  { %1944 = vmatpush1.bf16.msra.mxu0 %v2543_v33  ;;  %1781 = vmatprep.subr.bf16.mxu1 %v2548_v34  ;;  %v2629_v33 = vld [vmem:[#allocation5 + $0x6e4] ss:$8 sps:$4 sm:$0xff]   ;;  %v66_v34 = vcombine.high %v2890_v35, %v2890_v35  ;;  %v2630_v35 = vld [vmem:[#allocation5 + $0x2f0] ss:$8 sps:$4 sm:$0xff]  }
  0xaa   :  { %1945 = vmatprep.subr.bf16.mxu0 %v2551_v36  ;;  %1811 = vmatprep.mubr.bf16.mxu1 %v138_v44  ;;  %v100_v36 = vcombine.high %v2896_v38, %v2896_v38  ;;  %v2638_v38 = vld [vmem:[#allocation5 + $0x304] ss:$8 sps:$4 sm:$0xff]  }
  0xab   :  { %1975 = vmatprep.mubr.bf16.mxu0 %v146_v48 }
  0xac   :  { %1782 = vmatpush1.bf16.msra.mxu1 %v2546_v14  ;;  %v2624_v14 = vld [vmem:[#allocation5 + $0x2e0] ss:$8 sps:$4 sm:$0xff]   ;;  %v2914_v44 = vrot.slane %v100_v36, %v2866_v49  ;;  %v2710_v36 = vld [vmem:[#allocation5 + $0x3c4] ss:$8 sps:$4 sm:$0xff]  }
  0xad   :  { %1946 = vmatpush1.bf16.msra.mxu0 %v2549_v39  ;;  %1783 = vmatprep.subr.bf16.mxu1 %v2554_v41  ;;  %v2627_v39 = vld [vmem:[#allocation5 + $0x6e0] ss:$8 sps:$4 sm:$0xff]   ;;  %v2635_v41 = vld [vmem:[#allocation5 + $0x6f4] ss:$8 sps:$4 sm:$0xff]  }
  0xae   :  { %1947 = vmatprep.subr.bf16.mxu0 %v2557_v42  ;;  %v2911_v42 = vrot.slane %v66_v34, %v2866_v49  ;;  %v116_v48 = vcombine.high %v2914_v44, %v2914_v44  ;;  %v145_v49 = vpack.c.bf16 %v2902_v40, %v2902_v40  ;;  %v2653_v40 = vld [vmem:[#allocation5 + $0x724] ss:$8 sps:$4 sm:$0xff]   ;;  %v2705_v34 = vld [vmem:[#allocation5 + $0x7b0] ss:$8 sps:$4 sm:$0xff]  }
  0xb0   :  { %1784 = vmatpush1.bf16.msra.mxu1 %v2552_v46  ;;  %v2641_v46 = vld [vmem:[#allocation5 + $0x704] ss:$8 sps:$4 sm:$0xff]  }
  0xb1   :  { %1948 = vmatpush1.bf16.msra.mxu0 %v2555_v47  ;;  %1785 = vmatprep.subr.bf16.mxu1 %v2560_v50  ;;  %v82_v47 = vcombine.high %v2911_v42, %v2911_v42  ;;  %v137_v50 = vpack.c.bf16 %v2894_v37, %v2894_v37  ;;  %v2650_v37 = vld [vmem:[#allocation5 + $0x324] ss:$8 sps:$4 sm:$0xff]  }
  0xb2   :  { %1949 = vmatprep.subr.bf16.mxu0 %v2563_v51  ;;  %v2636_v51 = vld [vmem:[#allocation5 + $0x300] ss:$8 sps:$4 sm:$0xff]  }
  0xb4   :  { %1786 = vmatpush1.bf16.msra.mxu1 %v2558_v52  ;;  %v2639_v52 = vld [vmem:[#allocation5 + $0x700] ss:$8 sps:$4 sm:$0xff]  }
  0xb5   :  { %1950 = vmatpush1.bf16.msra.mxu0 %v2561_v53  ;;  %1787 = vmatprep.subr.bf16.mxu1 %v2566_v54  ;;  %v2644_v53 = vld [vmem:[#allocation5 + $0x314] ss:$8 sps:$4 sm:$0xff]  }
  0xb6   :  { %1951 = vmatprep.subr.bf16.mxu0 %v2569_v55  ;;  %v2647_v54 = vld [vmem:[#allocation5 + $0x714] ss:$8 sps:$4 sm:$0xff]   ;;  %v140_v55 = vpack.c.bf16 %v82_v47, %v82_v47  ;;  %v2725_v47 = vld [vmem:[#allocation5 + $0x7e4] ss:$8 sps:$4 sm:$0xff]  }
  0xb8   :  { %1788 = vmatpush1.bf16.msra.mxu1 %v2564_v56  ;;  %v148_v56 = vpack.c.bf16 %v116_v48, %v116_v48  ;;  %v2720_v48 = vld [vmem:[#allocation5 + $0x3e0] ss:$8 sps:$4 sm:$0xff]  }
  0xb9   :  { %1952 = vmatpush1.bf16.msra.mxu0 %v2567_v57  ;;  %1789 = vmatprep.subr.bf16.mxu1 %v2572_v58  ;;  %v2642_v57 = vld [vmem:[#allocation5 + $0x310] ss:$8 sps:$4 sm:$0xff]  }
  0xba   :  { %1953 = vmatprep.subr.bf16.mxu0 %v2575_v59  ;;  %v2645_v58 = vld [vmem:[#allocation5 + $0x710] ss:$8 sps:$4 sm:$0xff]   ;;  %v2648_v59 = vld [vmem:[#allocation5 + $0x320] ss:$8 sps:$4 sm:$0xff]  }
  0xbc   :  { %1790 = vmatpush1.bf16.msra.mxu1 %v2570_v60  ;;  %v2651_v60 = vld [vmem:[#allocation5 + $0x720] ss:$8 sps:$4 sm:$0xff]  }
  0xbd   :  { %1954 = vmatpush1.bf16.msra.mxu0 %v2573_v61  ;;  %1791 = vmatprep.subr.bf16.mxu1 %v2578_v62  ;;  %v2656_v61 = vld [vmem:[#allocation5 + $0x334] ss:$8 sps:$4 sm:$0xff]  }
  0xbe   :  { %1955 = vmatprep.subr.bf16.mxu0 %v2581_v63  ;;  %v2659_v62 = vld [vmem:[#allocation5 + $0x734] ss:$8 sps:$4 sm:$0xff]   ;;  %v2654_v63 = vld [vmem:[#allocation5 + $0x330] ss:$8 sps:$4 sm:$0xff]  }
  0xc0   :  { %1792 = vmatpush1.bf16.msra.mxu1 %v2576_v0  ;;  %v2657_v0 = vld [vmem:[#allocation5 + $0x730] ss:$8 sps:$4 sm:$0xff]  }
  0xc1   :  { %1956 = vmatpush1.bf16.msra.mxu0 %v2579_v1  ;;  %1793 = vmatprep.subr.bf16.mxu1 %v2584_v2  ;;  %v2662_v1 = vld [vmem:[#allocation5 + $0x344] ss:$8 sps:$4 sm:$0xff]  }
  0xc2   :  { %1957 = vmatprep.subr.bf16.mxu0 %v2587_v3  ;;  %v2665_v2 = vld [vmem:[#allocation5 + $0x744] ss:$8 sps:$4 sm:$0xff]   ;;  %v2660_v3 = vld [vmem:[#allocation5 + $0x340] ss:$8 sps:$4 sm:$0xff]  }
  0xc4   :  { %1794 = vmatpush1.bf16.msra.mxu1 %v2582_v4  ;;  %v2663_v4 = vld [vmem:[#allocation5 + $0x740] ss:$8 sps:$4 sm:$0xff]  }
  0xc5   :  { %1958 = vmatpush1.bf16.msra.mxu0 %v2585_v5  ;;  %1795 = vmatprep.subr.bf16.mxu1 %v2590_v6  ;;  %v2668_v5 = vld [vmem:[#allocation5 + $0x354] ss:$8 sps:$4 sm:$0xff]  }
  0xc6   :  { %1959 = vmatprep.subr.bf16.mxu0 %v2593_v7  ;;  %v2671_v6 = vld [vmem:[#allocation5 + $0x754] ss:$8 sps:$4 sm:$0xff]   ;;  %v2666_v7 = vld [vmem:[#allocation5 + $0x350] ss:$8 sps:$4 sm:$0xff]  }
  0xc8   :  { %1796 = vmatpush1.bf16.msra.mxu1 %v2588_v8  ;;  %v2669_v8 = vld [vmem:[#allocation5 + $0x750] ss:$8 sps:$4 sm:$0xff]  }
  0xc9   :  { %1960 = vmatpush1.bf16.msra.mxu0 %v2591_v9  ;;  %1797 = vmatprep.subr.bf16.mxu1 %v2596_v10  ;;  %v2674_v9 = vld [vmem:[#allocation5 + $0x364] ss:$8 sps:$4 sm:$0xff]  }
  0xca   :  { %1961 = vmatprep.subr.bf16.mxu0 %v2599_v11  ;;  %v2677_v10 = vld [vmem:[#allocation5 + $0x764] ss:$8 sps:$4 sm:$0xff]   ;;  %v2672_v11 = vld [vmem:[#allocation5 + $0x360] ss:$8 sps:$4 sm:$0xff]  }
  0xcc   :  { %1798 = vmatpush1.bf16.msra.mxu1 %v2594_v12  ;;  %v2675_v12 = vld [vmem:[#allocation5 + $0x760] ss:$8 sps:$4 sm:$0xff]  }
  0xcd   :  { %1962 = vmatpush1.bf16.msra.mxu0 %v2597_v13  ;;  %1799 = vmatprep.subr.bf16.mxu1 %v2602_v16  ;;  %v2680_v13 = vld [vmem:[#allocation5 + $0x374] ss:$8 sps:$4 sm:$0xff]  }
  0xce   :  { %1963 = vmatprep.subr.bf16.mxu0 %v2605_v17  ;;  %v2683_v16 = vld [vmem:[#allocation5 + $0x774] ss:$8 sps:$4 sm:$0xff]   ;;  %v2678_v17 = vld [vmem:[#allocation5 + $0x370] ss:$8 sps:$4 sm:$0xff]  }
  0xd0   :  { %1800 = vmatpush1.bf16.msra.mxu1 %v2600_v18  ;;  %v2681_v18 = vld [vmem:[#allocation5 + $0x770] ss:$8 sps:$4 sm:$0xff]  }
  0xd1   :  { %1964 = vmatpush1.bf16.msra.mxu0 %v2603_v19  ;;  %1801 = vmatprep.subr.bf16.mxu1 %v2608_v20  ;;  %v2686_v19 = vld [vmem:[#allocation5 + $0x384] ss:$8 sps:$4 sm:$0xff]  }
  0xd2   :  { %1965 = vmatprep.subr.bf16.mxu0 %v2611_v21  ;;  %v2689_v20 = vld [vmem:[#allocation5 + $0x784] ss:$8 sps:$4 sm:$0xff]   ;;  %v2684_v21 = vld [vmem:[#allocation5 + $0x380] ss:$8 sps:$4 sm:$0xff]  }
  0xd4   :  { %1802 = vmatpush1.bf16.msra.mxu1 %v2606_v22  ;;  %v2687_v22 = vld [vmem:[#allocation5 + $0x780] ss:$8 sps:$4 sm:$0xff]  }
  0xd5   :  { %1966 = vmatpush1.bf16.msra.mxu0 %v2609_v23  ;;  %1803 = vmatprep.subr.bf16.mxu1 %v2614_v24  ;;  %v2692_v23 = vld [vmem:[#allocation5 + $0x394] ss:$8 sps:$4 sm:$0xff]  }
  0xd6   :  { %1967 = vmatprep.subr.bf16.mxu0 %v2617_v25  ;;  %v2695_v24 = vld [vmem:[#allocation5 + $0x794] ss:$8 sps:$4 sm:$0xff]   ;;  %v2690_v25 = vld [vmem:[#allocation5 + $0x390] ss:$8 sps:$4 sm:$0xff]  }
  0xd8   :  { %1804 = vmatpush1.bf16.msra.mxu1 %v2612_v26  ;;  %v2693_v26 = vld [vmem:[#allocation5 + $0x790] ss:$8 sps:$4 sm:$0xff]  }
  0xd9   :  { %1968 = vmatpush1.bf16.msra.mxu0 %v2615_v27  ;;  %1805 = vmatprep.subr.bf16.mxu1 %v2620_v28  ;;  %v2698_v27 = vld [vmem:[#allocation5 + $0x3a4] ss:$8 sps:$4 sm:$0xff]  }
  0xda   :  { %1969 = vmatprep.subr.bf16.mxu0 %v2623_v29  ;;  %v2701_v28 = vld [vmem:[#allocation5 + $0x7a4] ss:$8 sps:$4 sm:$0xff]   ;;  %v2696_v29 = vld [vmem:[#allocation5 + $0x3a0] ss:$8 sps:$4 sm:$0xff]  }
  0xdc   :  { %1806 = vmatpush1.bf16.msra.mxu1 %v2618_v30  ;;  %v2699_v30 = vld [vmem:[#allocation5 + $0x7a0] ss:$8 sps:$4 sm:$0xff]  }
  0xdd   :  { %1970 = vmatpush1.bf16.msra.mxu0 %v2621_v31  ;;  %1807 = vmatprep.subr.bf16.mxu1 %v2626_v32  ;;  %v2704_v31 = vld [vmem:[#allocation5 + $0x3b4] ss:$8 sps:$4 sm:$0xff]  }
  0xde   :  { %1971 = vmatprep.subr.bf16.mxu0 %v2629_v33  ;;  %v2707_v32 = vld [vmem:[#allocation5 + $0x7b4] ss:$8 sps:$4 sm:$0xff]   ;;  %v2702_v33 = vld [vmem:[#allocation5 + $0x3b0] ss:$8 sps:$4 sm:$0xff]  }
  0xe0   :  { %1808 = vmatpush1.bf16.msra.mxu1 %v2624_v14  ;;  %v2713_v14 = vld [vmem:[#allocation5 + $0x7c4] ss:$8 sps:$4 sm:$0xff]  }
  0xe1   :  { %1972 = vmatpush1.bf16.msra.mxu0 %v2627_v39  ;;  %1809 = vmatprep.subr.bf16.mxu1 %v2632_v15  ;;  %v2708_v39 = vld [vmem:[#allocation5 + $0x3c0] ss:$8 sps:$4 sm:$0xff]  }
  0xe2   :  { %1973 = vmatprep.subr.bf16.mxu0 %v2635_v41  ;;  %v2711_v15 = vld [vmem:[#allocation5 + $0x7c0] ss:$8 sps:$4 sm:$0xff]   ;;  %v2716_v41 = vld [vmem:[#allocation5 + $0x3d4] ss:$8 sps:$4 sm:$0xff]  }
  0xe4   :  { %1810 = vmatpush1.bf16.msra.mxu1 %v2630_v35  ;;  %v2719_v35 = vld [vmem:[#allocation5 + $0x7d4] ss:$8 sps:$4 sm:$0xff]  }
  0xe5   :  { %1974 = vmatpush1.bf16.msra.mxu0 %v2633_v45  ;;  %1820 = vmatprep.subr.bf16.mxu1 %v2638_v38  ;;  %v2714_v45 = vld [vmem:[#allocation5 + $0x3d0] ss:$8 sps:$4 sm:$0xff]  }
  0xe6   :  { %1984 = vmatprep.subr.bf16.mxu0 %v2641_v46  ;;  %v2717_v38 = vld [vmem:[#allocation5 + $0x7d0] ss:$8 sps:$4 sm:$0xff]   ;;  %v2722_v46 = vld [vmem:[#allocation5 + $0x3e4] ss:$8 sps:$4 sm:$0xff]  }
  0xe7   :  { %1812 = vmatmul.mubr.bf16.vlgmr.msra.gmra.mrb[0].mxu1 %v137_v50  ;;  %v2723_v50 = vld [vmem:[#allocation5 + $0x7e0] ss:$8 sps:$4 sm:$0xff]  }
  0xe8   :  { %1976 = vmatmul.mubr.bf16.vlgmr.msra.gmra.mrb[0].mxu0 %v145_v49  ;;  %1821 = vmatpush1.bf16.msra.mxu1 %v2636_v51  ;;  %v2728_v49 = vld [vmem:[#allocation5 + $0x3f4] ss:$8 sps:$4 sm:$0xff]  }
  0xe9   :  { %1985 = vmatpush1.bf16.msra.mxu0 %v2639_v52  ;;  %1822 = vmatprep.subr.bf16.mxu1 %v2644_v53  ;;  %v2731_v51 = vld [vmem:[#allocation5 + $0x7f4] ss:$8 sps:$4 sm:$0xff]   ;;  %v2726_v52 = vld [vmem:[#allocation5 + $0x3f0] ss:$8 sps:$4 sm:$0xff]  }
  0xea   :  { %1986 = vmatprep.subr.bf16.mxu0 %v2647_v54  ;;  %1852 = vmatprep.mubr.bf16.mxu1 %v140_v55  ;;  %v2729_v53 = vld [vmem:[#allocation5 + $0x7f0] ss:$8 sps:$4 sm:$0xff]   ;;  %v139_v54 = vpack.c.bf16 %v2911_v42, %v2911_v42  ;;  %v147_v55 = vpack.c.bf16 %v2914_v44, %v2914_v44 }
  0xeb   :  { %2016 = vmatprep.mubr.bf16.mxu0 %v148_v56  ;;  %v409_v56 = vsub.s32 0, %v2863_v43 }
  0xec   :  { %1823 = vmatpush1.bf16.msra.mxu1 %v2642_v57  ;;  %v405_v57 = vld [vmem:[%s2947_s2] sm:$0x3]  ;;  %s2778_s2 = scalar_lea.vmem %s2046_s12, 64 }
  0xed   :  { %1987 = vmatpush1.bf16.msra.mxu0 %v2645_v58  ;;  %1824 = vmatprep.subr.bf16.mxu1 %v2650_v37  ;;  %v413_v58 = vsub.s32 1, %v2863_v43  ;;  %v410_v37 = vrot.slane %v405_v57, %v409_v56  ;;  %p2779_p2 = scmp.ne.s32.totalorder %s2046_s12, %s2778_s2  ;;  %p2784_p4 = scmp.lt.s32.totalorder %s2778_s2, %s2778_s2 }
  0xee   :  { %1988 = vmatprep.subr.bf16.mxu0 %v2653_v40 }
  0xef   :  { %v414_v40 = vrot.slane %v405_v57, %v413_v58  ;;  %p2785_p5 = por %p2784_p4, %p2783_p3 }
  0xf0   :  { %1825 = vmatpush1.bf16.msra.mxu1 %v2648_v59 }
  0xf1   :  { %1989 = vmatpush1.bf16.msra.mxu0 %v2651_v60  ;;  %1826 = vmatprep.subr.bf16.mxu1 %v2656_v61  ;;  %p2786_p6 = pnand %p2785_p5, %p2779_p2 }
  0xf2   :  { %1990 = vmatprep.subr.bf16.mxu0 %v2659_v62 }
  0xf4   :  { %1827 = vmatpush1.bf16.msra.mxu1 %v2654_v63 }
  0xf5   :  { %1991 = vmatpush1.bf16.msra.mxu0 %v2657_v0  ;;  %1828 = vmatprep.subr.bf16.mxu1 %v2662_v1 }
  0xf6   :  { %1992 = vmatprep.subr.bf16.mxu0 %v2665_v2 }
  0xf8   :  { %1829 = vmatpush1.bf16.msra.mxu1 %v2660_v3 }
  0xf9   :  { %1993 = vmatpush1.bf16.msra.mxu0 %v2663_v4  ;;  %1830 = vmatprep.subr.bf16.mxu1 %v2668_v5 }
  0xfa   :  { %1994 = vmatprep.subr.bf16.mxu0 %v2671_v6 }
  0xfc   :  { %1831 = vmatpush1.bf16.msra.mxu1 %v2666_v7 }
  0xfd   :  { %1995 = vmatpush1.bf16.msra.mxu0 %v2669_v8  ;;  %1832 = vmatprep.subr.bf16.mxu1 %v2674_v9 }
  0xfe   :  { %1996 = vmatprep.subr.bf16.mxu0 %v2677_v10 }
 0x100   :  { %1833 = vmatpush1.bf16.msra.mxu1 %v2672_v11 }
 0x101   :  { %1997 = vmatpush1.bf16.msra.mxu0 %v2675_v12  ;;  %1834 = vmatprep.subr.bf16.mxu1 %v2680_v13 }
 0x102   :  { %1998 = vmatprep.subr.bf16.mxu0 %v2683_v16 }
 0x104   :  { %1835 = vmatpush1.bf16.msra.mxu1 %v2678_v17 }
 0x105   :  { %1999 = vmatpush1.bf16.msra.mxu0 %v2681_v18  ;;  %1836 = vmatprep.subr.bf16.mxu1 %v2686_v19 }
 0x106   :  { %2000 = vmatprep.subr.bf16.mxu0 %v2689_v20 }
 0x108   :  { %1837 = vmatpush1.bf16.msra.mxu1 %v2684_v21 }
 0x109   :  { %2001 = vmatpush1.bf16.msra.mxu0 %v2687_v22  ;;  %1838 = vmatprep.subr.bf16.mxu1 %v2692_v23 }
 0x10a   :  { %2002 = vmatprep.subr.bf16.mxu0 %v2695_v24 }
 0x10c   :  { %1839 = vmatpush1.bf16.msra.mxu1 %v2690_v25 }
 0x10d   :  { %2003 = vmatpush1.bf16.msra.mxu0 %v2693_v26  ;;  %1840 = vmatprep.subr.bf16.mxu1 %v2698_v27 }
 0x10e   :  { %2004 = vmatprep.subr.bf16.mxu0 %v2701_v28 }
 0x110   :  { %1841 = vmatpush1.bf16.msra.mxu1 %v2696_v29 }
 0x111   :  { %2005 = vmatpush1.bf16.msra.mxu0 %v2699_v30  ;;  %1842 = vmatprep.subr.bf16.mxu1 %v2704_v31 }
 0x112   :  { %2006 = vmatprep.subr.bf16.mxu0 %v2707_v32 }
 0x114   :  { %1843 = vmatpush1.bf16.msra.mxu1 %v2702_v33 }
 0x115   :  { %2007 = vmatpush1.bf16.msra.mxu0 %v2705_v34  ;;  %1844 = vmatprep.subr.bf16.mxu1 %v2710_v36 }
 0x116   :  { %2008 = vmatprep.subr.bf16.mxu0 %v2713_v14 }
 0x118   :  { %1845 = vmatpush1.bf16.msra.mxu1 %v2708_v39 }
 0x119   :  { %2009 = vmatpush1.bf16.msra.mxu0 %v2711_v15  ;;  %1846 = vmatprep.subr.bf16.mxu1 %v2716_v41 }
 0x11a   :  { %2010 = vmatprep.subr.bf16.mxu0 %v2719_v35 }
 0x11c   :  { %1847 = vmatpush1.bf16.msra.mxu1 %v2714_v45 }
 0x11d   :  { %2011 = vmatpush1.bf16.msra.mxu0 %v2717_v38  ;;  %1848 = vmatprep.subr.bf16.mxu1 %v2722_v46 }
 0x11e   :  { %2012 = vmatprep.subr.bf16.mxu0 %v2725_v47 }
 0x120   :  { %1849 = vmatpush1.bf16.msra.mxu1 %v2720_v48 }
 0x121   :  { %2013 = vmatpush1.bf16.msra.mxu0 %v2723_v50  ;;  %1850 = vmatprep.subr.bf16.mxu1 %v2728_v49 }
 0x122   :  { %2014 = vmatprep.subr.bf16.mxu0 %v2731_v51 }
 0x124   :  { %1851 = vmatpush1.bf16.msra.mxu1 %v2726_v52 }
 0x125   :  { %2015 = vmatpush1.bf16.msra.mxu0 %v2729_v53 }
 0x127   :  { %1853 = vmatmul.mubr.bf16.vlgmr.msra.gmra.mrb[0].mxu1 %v139_v54 }
 0x128   :  { %2017 = vmatmul.mubr.bf16.vlgmr.msra.gmra.mrb[0].mxu0 %v147_v55 }
 0x1fa   :  { %v1854_v59 = vpop.f32.mrb[0].mxu1 }
 0x1fb   :  { %v2018_v60 = vpop.f32.mrb[0].mxu0  ;;  %v2312_v42 = vadd.f32 %v1854_v59, %v410_v37  ;;  %v1856_v61 = vpop.f32.mrb[1].mxu1 }
 0x1fc   :  { %v2020_v62 = vpop.f32.mrb[1].mxu0  ;;  %v2314_v44 = vadd.f32 %v1856_v61, %v414_v40  ;;  %v1858_v63 = vpop.f32.mrb[2].mxu1 }
 0x1fd   :  { %v2022_v0 = vpop.f32.mrb[2].mxu0  ;;  %v2313_v1 = vadd.f32 %v2312_v42, %v2018_v60  ;;  %v1859_v2 = vpop.f32.mrb[3].mxu1 }
 0x1fe   :  { %v2023_v3 = vpop.f32.mrb[3].mxu0  ;;  %v2315_v4 = vadd.f32 %v2314_v44, %v2020_v62 }
 0x1ff   :  { %v2025_v5 = vmax.f32 %v2313_v1, 0.0 }
 0x200   :  { %v2026_v6 = vmax.f32 %v2315_v4, 0.0 }
 0x202   :  { %v2029_v7 = vcombine.low %v2025_v5, %v2026_v6 }
 0x204   :  { %2311 = vst.sshfl [vmem:[#allocation7] sm:$0x33 pattern:$0x76325410] %v2029_v7 }
 0x205   :  { %2789 = shalt.err (!%p2786_p6)
}
 0x206   :  { %s2790_s15 = scalar_lea.hbm %s2948_s3, 64 }
 0x207   :  { %p2791_p7 = scmp.ne.s32.totalorder %s2948_s3, %s2790_s15  ;;  %p2794_p8 = scmp.lt.u32.totalorder %s2790_s15, %s2948_s3 }
 0x209   :  { %p2796_p9 = pnand %p2794_p8, %p2791_p7 }
 0x20b   :  { %2799 = shalt.err (!%p2796_p9)
}
 0x20c   :  { %2048 = dma.vmem_to_hbm [thread:$0]  %s2046_s12, 64, %s2948_s3, [#allocation4]  }
 0x20d   :  { %2804 = dma.done.wait [#allocation4], 64  }
 0x20e   :  { %2805 = vsyncadd [#allocation4], 4294967232 }
 0x20f   :  { %2052 = vsyncpa [#allocation3], 1 }
 0x210   :  { %2053 = vsyncpa [#allocation6], 1 }
 0x211   :  { %2054 = vsyncpa [#allocation4], 1 }

</bundles_post_ra>
